<compile_context>
chip_gen: v7x
topology: tpu7x:2x2x1
jax: 0.10.0
libtpu: 0.0.40
codegen_flags: <defaults>
</compile_context>

<pallas_src>
import functools
import math

import jax
import jax.numpy as jnp
from jax.experimental import pallas as pl
from jax.experimental.pallas import tpu as pltpu


def _krfe_kernel(x_ref, wqkv_ref, bqkv_ref, wout_ref, vec_ref, out_ref, *,
                 num_heads, compute_dtype):
    H = num_heads
    B, S, D = x_ref.shape
    hd = D // H
    cd = lambda a: a.astype(compute_dtype)      # identity for the f32 default

    # --- Fused QKV projection: one flat MXU contraction -----------------------
    # Batch folded into the row (M) dimension; weights flat (D, 3D) -> a single
    # (B*S, D) x (D, 3D) push instead of 3H tiny batched pushes of broadcast x.
    x2 = cd(x_ref[...].reshape(B * S, D))                       # (B*S, D)
    qkv = jnp.dot(x2, wqkv_ref[...], preferred_element_type=jnp.float32)
    qkv = qkv + bqkv_ref[...]                                   # (B*S, 3D) f32

    # --- Causal "peek only current and past" mask ------------------------------
    # One (S, S) iota compare; jnp.where broadcasts it over batch and heads.
    row = jax.lax.broadcasted_iota(jnp.int32, (S, S), 0)
    col = jax.lax.broadcasted_iota(jnp.int32, (S, S), 1)
    future = (col > row)[None, :, :]                            # (1, S, S) bool

    # --- Per-head scaled-dot-product attention --------------------------------
    # Heads come out of static lane slices of the flat qkv result.  The
    # 1/sqrt(hd) scale is already folded into Wq / bq on the host.
    # NOTE: for production S, replace the materialized (B, S, S) scores with a
    # KV-tiled flash-style loop (running max/sum scratch) so the quadratic
    # score tensor never exceeds scoped VMEM (v7x: 64 MiB physical).
    ctx_heads = []
    for h in range(H):                                          # static unroll
        lo = h * hd
        q_h = cd(qkv[:, lo:lo + hd].reshape(B, S, hd))          # (B, S, hd)
        k_h = cd(qkv[:, D + lo:D + lo + hd].reshape(B, S, hd))
        v_h = cd(qkv[:, 2 * D + lo:2 * D + lo + hd].reshape(B, S, hd))

        s = jnp.einsum("bqd,bkd->bqk", q_h, k_h,
                       preferred_element_type=jnp.float32)      # (B, S, S) f32
        s = jnp.where(future, -1e9, s)
        # Numerically-stable softmax; exact reciprocal (EUP, effectively free).
        s = s - jnp.max(s, axis=-1, keepdims=True)
        p = jnp.exp(s)
        p = p * pl.reciprocal(jnp.sum(p, axis=-1, keepdims=True), approx=False)

        ctx_heads.append(jnp.einsum("bqk,bkd->bqd", cd(p), v_h,
                                    preferred_element_type=jnp.float32))

    ctx = jnp.concatenate(ctx_heads, axis=-1)                   # (B, S, D)

    # --- Output projection with the KRFE residual folded in -------------------
    # W' = Wo @ (I + Wl), b' = bo @ (I + Wl) + bl  (folded on the host), so the
    # MHA output projection + residual linear collapse to one flat matmul.
    ctx2 = cd(ctx.reshape(B * S, D))
    y = jnp.dot(ctx2, wout_ref[...], preferred_element_type=jnp.float32)
    vec = vec_ref[...]                                          # (3, D): [b'; gamma; beta]
    y = y + vec[0:1, :]                                         # (B*S, D)

    # --- LayerNorm (eps = 1e-5), f32 VPU math ----------------------------------
    mean = jnp.mean(y, axis=-1, keepdims=True)
    var = jnp.mean((y - mean) ** 2, axis=-1, keepdims=True)
    y = (y - mean) * jax.lax.rsqrt(var + 1e-5)
    y = y * vec[1:2, :] + vec[2:3, :]

    out_ref[...] = y.reshape(B, S, D).astype(out_ref.dtype)


def fuse_params(params, num_heads):
    """Fold/fuse the per-layer weights into the kernel operand layout (static).

    - W_qkv is kept FLAT as (D, 3D) (columns ordered [q | k | v], heads laid out
      h-major within each D block, matching the PyTorch head split).
    - The 1/sqrt(head_size) attention scale is folded into Wq and bq.
    - The KRFE residual is folded:  W' = Wo @ (I + Wl),  b' = bo @ (I + Wl) + bl.
    - b', LayerNorm gamma and beta are packed into one (3, D) operand.
    """
    D = params["wq"].shape[0]
    hd = D // num_heads
    scale = 1.0 / math.sqrt(hd)

    w_qkv = jnp.concatenate(
        [params["wq"] * scale, params["wk"], params["wv"]], axis=1)      # (D, 3D)
    b_qkv = jnp.concatenate(
        [params["bq"] * scale, params["bk"], params["bv"]], axis=1)      # (1, 3D)

    i_plus_wl = jnp.eye(D, dtype=jnp.float32) + params["wl"]
    w_out = jnp.dot(params["wo"], i_plus_wl)                             # (D, D)
    b_out = jnp.dot(params["bo"], i_plus_wl) + params["bl"]              # (1, D)

    vecs = jnp.concatenate([b_out, params["ln_gamma"], params["ln_beta"]],
                           axis=0)                                       # (3, D)
    return w_qkv, b_qkv, w_out, vecs


def krfe_forward(x, params, *, num_heads, compute_dtype=jnp.float32):
    """KRFE forward (eval mode). x = skill_inputs: (B, S, D) float32.

    Single kernel invocation (grid collapsed); causal mask built in-kernel.
    On v6e/v7x, compute_dtype=jnp.bfloat16 feeds bf16 MXU operands (f32
    accumulate; mask/softmax/LayerNorm stay f32).  Keep f32 on v5e.
    """
    B, S, D = x.shape
    H = num_heads
    assert D % H == 0

    w_qkv, b_qkv, w_out, vecs = fuse_params(params, H)
    w_qkv = w_qkv.astype(compute_dtype)
    w_out = w_out.astype(compute_dtype)

    kernel = functools.partial(_krfe_kernel, num_heads=H,
                               compute_dtype=compute_dtype)

    return pl.pallas_call(
        kernel,
        out_shape=jax.ShapeDtypeStruct((B, S, D), jnp.float32),
        grid=(1,),                                  # collapsed: one step, B in M-dim
        in_specs=[
            pl.BlockSpec((B, S, D), lambda i: (0, 0, 0)),   # x (whole array)
            pl.BlockSpec((D, 3 * D), lambda i: (0, 0)),     # flat W_qkv (scale folded)
            pl.BlockSpec((1, 3 * D), lambda i: (0, 0)),     # single qkv bias row
            pl.BlockSpec((D, D), lambda i: (0, 0)),         # folded W' = Wo @ (I + Wl)
            pl.BlockSpec((3, D), lambda i: (0, 0)),         # [b'; ln_gamma; ln_beta]
        ],
        out_specs=pl.BlockSpec((B, S, D), lambda i: (0, 0, 0)),
        compiler_params=pltpu.CompilerParams(
            dimension_semantics=("arbitrary",)),
    )(x, w_qkv, b_qkv, w_out, vecs)


def init_params(key, in_dim):
    """Deterministic synthetic parameters (weights stored as (in, out))."""
    ks = jax.random.split(key, 10)
    bound = 1.0 / math.sqrt(in_dim)
    u = lambda k, shape: jax.random.uniform(k, shape, jnp.float32, -bound, bound)
    return {
        "wq": u(ks[0], (in_dim, in_dim)), "bq": u(ks[1], (1, in_dim)),
        "wk": u(ks[2], (in_dim, in_dim)), "bk": u(ks[3], (1, in_dim)),
        "wv": u(ks[4], (in_dim, in_dim)), "bv": u(ks[5], (1, in_dim)),
        "wo": u(ks[6], (in_dim, in_dim)), "bo": u(ks[7], (1, in_dim)),
        "wl": u(ks[8], (in_dim, in_dim)), "bl": u(ks[9], (1, in_dim)),
        "ln_gamma": jnp.ones((1, in_dim), jnp.float32),
        "ln_beta": jnp.zeros((1, in_dim), jnp.float32),
    }


def krfe_reference(x, mask, params, num_heads):
    """Pure-JAX transcription of the PyTorch KRFE.forward (eval mode, unfused)."""
    B, S, D = x.shape
    H = num_heads
    hd = D // H
    with jax.default_matmul_precision("highest"):
        q = x @ params["wq"] + params["bq"]
        k = x @ params["wk"] + params["bk"]
        v = x @ params["wv"] + params["bv"]
        split = lambda t: t.reshape(B, S, H, hd).transpose(0, 2, 1, 3)
        q, k, v = split(q), split(k), split(v)
        s = jnp.einsum("bhid,bhjd->bhij", q, k) / math.sqrt(hd)
        s = jnp.where(mask[:, None, :, :] > 0.5, -1e9, s)
        p = jax.nn.softmax(s, axis=-1)
        ctx = jnp.einsum("bhij,bhjd->bhid", p, v)
        ctx = ctx.transpose(0, 2, 1, 3).reshape(B, S, D)
        o = ctx @ params["wo"] + params["bo"]
        y = o + (o @ params["wl"] + params["bl"])
        mean = y.mean(-1, keepdims=True)
        var = ((y - mean) ** 2).mean(-1, keepdims=True)
        y = (y - mean) / jnp.sqrt(var + 1e-5)
        return y * params["ln_gamma"] + params["ln_beta"]


if __name__ == "__main__":
    B, S, D, H = 2, 8, 32, 4   # batch, seq, in_dim, n_head
    key = jax.random.PRNGKey(0)
    k_x, k_p = jax.random.split(key)

    # skill_inputs: (B, S, D).  skill_query is unused by KRFE.forward (kr path).
    x = jax.random.normal(k_x, (B, S, D), jnp.float32)
    params = init_params(k_p, D)

    out = krfe_forward(x, params, num_heads=H)
    jax.block_until_ready(out)
    assert out.shape == (B, S, D)

    # Check against a pure-JAX transcription of the PyTorch forward with the
    # causal "peek only current and past" mask (1.0 == masked future position).
    # Tolerance is sized analytically for f32 end-to-end math: MXU f32-pass
    # matmul error plus the re-association from the W' = Wo @ (I + Wl) and
    # 1/sqrt(hd)-into-Wq folds (all O(D * eps) before the LayerNorm).
    causal = jnp.triu(jnp.ones((S, S), jnp.float32), k=1)
    mask = jnp.broadcast_to(causal, (B, S, S))
    ref = krfe_reference(x, mask, params, num_heads=H)
    err = float(jnp.max(jnp.abs(out - ref)))
    assert err < 1e-3, f"max abs error vs reference: {err}"

    print("KERNEL_OK")
</pallas_src>

<mosaic_0001>
module attributes {stable_mosaic.version = 11 : i64} {
  func.func @_krfe_kernel(%arg0: i32, %arg1: memref<2x8x32xf32, #tpu.memory_space<vmem>>, %arg2: memref<32x96xf32, #tpu.memory_space<vmem>>, %arg3: memref<1x96xf32, #tpu.memory_space<vmem>>, %arg4: memref<32x32xf32, #tpu.memory_space<vmem>>, %arg5: memref<3x32xf32, #tpu.memory_space<vmem>>, %arg6: memref<2x8x32xf32, #tpu.memory_space<vmem>>) attributes {dimension_semantics = [#tpu.dimension_semantics<arbitrary>], iteration_bounds = array<i64: 1>, scalar_prefetch = 0 : i64, scratch_operands = 0 : i64, tpu.core_type = #tpu.core_type<tc>, window_params = [{pipeline_mode = #tpu.pipeline_mode<synchronous>, transform_indices = @transform_0, window_bounds = array<i64: 2, 8, 32>}, {pipeline_mode = #tpu.pipeline_mode<synchronous>, transform_indices = @transform_1, window_bounds = array<i64: 32, 96>}, {pipeline_mode = #tpu.pipeline_mode<synchronous>, transform_indices = @transform_2, window_bounds = array<i64: 1, 96>}, {pipeline_mode = #tpu.pipeline_mode<synchronous>, transform_indices = @transform_3, window_bounds = array<i64: 32, 32>}, {pipeline_mode = #tpu.pipeline_mode<synchronous>, transform_indices = @transform_4, window_bounds = array<i64: 3, 32>}, {pipeline_mode = #tpu.pipeline_mode<synchronous>, transform_indices = @transform_5, window_bounds = array<i64: 2, 8, 32>}]} {
    %c0 = arith.constant 0 : index
    %c0_0 = arith.constant 0 : index
    %c0_1 = arith.constant 0 : index
    %0 = vector.load %arg1[%c0, %c0_0, %c0_1] : memref<2x8x32xf32, #tpu.memory_space<vmem>>, vector<2x8x32xf32>
    %1 = vector.shape_cast %0 : vector<2x8x32xf32> to vector<16x32xf32>
    %c0_2 = arith.constant 0 : index
    %c0_3 = arith.constant 0 : index
    %2 = vector.load %arg2[%c0_2, %c0_3] : memref<32x96xf32, #tpu.memory_space<vmem>>, vector<32x96xf32>
    %cst = arith.constant dense<0.000000e+00> : vector<16x96xf32>
    %3 = tpu.matmul %1, %2, %cst {dimension_numbers = #tpu.dot_dimension_numbers<[1], [0], [0], [1], [0, 0, 1, 1], [], []>} : vector<16x32xf32>, vector<32x96xf32>, vector<16x96xf32> -> vector<16x96xf32>
    %c0_4 = arith.constant 0 : index
    %c0_5 = arith.constant 0 : index
    %4 = vector.load %arg3[%c0_4, %c0_5] : memref<1x96xf32, #tpu.memory_space<vmem>>, vector<1x96xf32>
    %5 = vector.broadcast %4 : vector<1x96xf32> to vector<16x96xf32>
    %6 = arith.addf %3, %5 : vector<16x96xf32>
    %7 = tpu.iota {dimensions = array<i32: 0>} : vector<8x8xi32>
    %8 = tpu.iota {dimensions = array<i32: 1>} : vector<8x8xi32>
    %9 = arith.cmpi sgt, %8, %7 : vector<8x8xi32>
    %10 = vector.shape_cast %9 : vector<8x8xi1> to vector<1x8x8xi1>
    %11 = vector.extract_strided_slice %6 {offsets = [0, 0], sizes = [16, 8], strides = [1, 1]} : vector<16x96xf32> to vector<16x8xf32>
    %12 = vector.shape_cast %11 : vector<16x8xf32> to vector<2x8x8xf32>
    %13 = vector.extract_strided_slice %6 {offsets = [0, 32], sizes = [16, 8], strides = [1, 1]} : vector<16x96xf32> to vector<16x8xf32>
    %14 = vector.shape_cast %13 : vector<16x8xf32> to vector<2x8x8xf32>
    %15 = vector.extract_strided_slice %6 {offsets = [0, 64], sizes = [16, 8], strides = [1, 1]} : vector<16x96xf32> to vector<16x8xf32>
    %16 = vector.shape_cast %15 : vector<16x8xf32> to vector<2x8x8xf32>
    "tpu.trace_start"() <{level = 10 : i32, message = "bqd,bkd->bqk"}> : () -> ()
    %cst_6 = arith.constant dense<0.000000e+00> : vector<2x8x8xf32>
    %17 = tpu.matmul %12, %14, %cst_6 {dimension_numbers = #tpu.dot_dimension_numbers<[2], [2], [1], [1], [0, 0, 0, 1, 1, 1], [0], [0]>} : vector<2x8x8xf32>, vector<2x8x8xf32>, vector<2x8x8xf32> -> vector<2x8x8xf32>
    %cst_7 = arith.constant -1.000000e+09 : f32
    "tpu.trace_stop"() : () -> ()
    %18 = vector.shape_cast %10 : vector<1x8x8xi1> to vector<1x8x8xi1>
    %19 = vector.broadcast %18 : vector<1x8x8xi1> to vector<2x8x8xi1>
    %20 = vector.broadcast %cst_7 : f32 to vector<2x8x8xf32>
    %21 = arith.select %19, %20, %17 : vector<2x8x8xi1>, vector<2x8x8xf32>
    %cst_8 = arith.constant dense<0xFF800000> : vector<2x8xf32>
    %22 = vector.multi_reduction <maximumf>, %21, %cst_8 [2] : vector<2x8x8xf32> to vector<2x8xf32>
    %23 = vector.shape_cast %22 : vector<2x8xf32> to vector<2x8x1xf32>
    %24 = vector.broadcast %23 : vector<2x8x1xf32> to vector<2x8x8xf32>
    %25 = arith.subf %21, %24 : vector<2x8x8xf32>
    %26 = math.exp %25 : vector<2x8x8xf32>
    %cst_9 = arith.constant dense<0.000000e+00> : vector<2x8xf32>
    %27 = vector.multi_reduction <add>, %26, %cst_9 [2] : vector<2x8x8xf32> to vector<2x8xf32>
    %28 = vector.shape_cast %27 : vector<2x8xf32> to vector<2x8x1xf32>
    %29 = tpu.reciprocal %28 : vector<2x8x1xf32> -> vector<2x8x1xf32>
    %30 = vector.broadcast %29 : vector<2x8x1xf32> to vector<2x8x8xf32>
    %31 = arith.mulf %26, %30 : vector<2x8x8xf32>
    "tpu.trace_start"() <{level = 10 : i32, message = "bqk,bkd->bqd"}> : () -> ()
    %cst_10 = arith.constant dense<0.000000e+00> : vector<2x8x8xf32>
    %32 = tpu.matmul %31, %16, %cst_10 {dimension_numbers = #tpu.dot_dimension_numbers<[2], [1], [1], [2], [0, 0, 0, 1, 1, 2], [0], [0]>} : vector<2x8x8xf32>, vector<2x8x8xf32>, vector<2x8x8xf32> -> vector<2x8x8xf32>
    "tpu.trace_stop"() : () -> ()
    %33 = vector.extract_strided_slice %6 {offsets = [0, 8], sizes = [16, 8], strides = [1, 1]} : vector<16x96xf32> to vector<16x8xf32>
    %34 = vector.shape_cast %33 : vector<16x8xf32> to vector<2x8x8xf32>
    %35 = vector.extract_strided_slice %6 {offsets = [0, 40], sizes = [16, 8], strides = [1, 1]} : vector<16x96xf32> to vector<16x8xf32>
    %36 = vector.shape_cast %35 : vector<16x8xf32> to vector<2x8x8xf32>
    %37 = vector.extract_strided_slice %6 {offsets = [0, 72], sizes = [16, 8], strides = [1, 1]} : vector<16x96xf32> to vector<16x8xf32>
    %38 = vector.shape_cast %37 : vector<16x8xf32> to vector<2x8x8xf32>
    "tpu.trace_start"() <{level = 10 : i32, message = "bqd,bkd->bqk"}> : () -> ()
    %cst_11 = arith.constant dense<0.000000e+00> : vector<2x8x8xf32>
    %39 = tpu.matmul %34, %36, %cst_11 {dimension_numbers = #tpu.dot_dimension_numbers<[2], [2], [1], [1], [0, 0, 0, 1, 1, 1], [0], [0]>} : vector<2x8x8xf32>, vector<2x8x8xf32>, vector<2x8x8xf32> -> vector<2x8x8xf32>
    %cst_12 = arith.constant -1.000000e+09 : f32
    "tpu.trace_stop"() : () -> ()
    %40 = vector.shape_cast %10 : vector<1x8x8xi1> to vector<1x8x8xi1>
    %41 = vector.broadcast %40 : vector<1x8x8xi1> to vector<2x8x8xi1>
    %42 = vector.broadcast %cst_12 : f32 to vector<2x8x8xf32>
    %43 = arith.select %41, %42, %39 : vector<2x8x8xi1>, vector<2x8x8xf32>
    %cst_13 = arith.constant dense<0xFF800000> : vector<2x8xf32>
    %44 = vector.multi_reduction <maximumf>, %43, %cst_13 [2] : vector<2x8x8xf32> to vector<2x8xf32>
    %45 = vector.shape_cast %44 : vector<2x8xf32> to vector<2x8x1xf32>
    %46 = vector.broadcast %45 : vector<2x8x1xf32> to vector<2x8x8xf32>
    %47 = arith.subf %43, %46 : vector<2x8x8xf32>
    %48 = math.exp %47 : vector<2x8x8xf32>
    %cst_14 = arith.constant dense<0.000000e+00> : vector<2x8xf32>
    %49 = vector.multi_reduction <add>, %48, %cst_14 [2] : vector<2x8x8xf32> to vector<2x8xf32>
    %50 = vector.shape_cast %49 : vector<2x8xf32> to vector<2x8x1xf32>
    %51 = tpu.reciprocal %50 : vector<2x8x1xf32> -> vector<2x8x1xf32>
    %52 = vector.broadcast %51 : vector<2x8x1xf32> to vector<2x8x8xf32>
    %53 = arith.mulf %48, %52 : vector<2x8x8xf32>
    "tpu.trace_start"() <{level = 10 : i32, message = "bqk,bkd->bqd"}> : () -> ()
    %cst_15 = arith.constant dense<0.000000e+00> : vector<2x8x8xf32>
    %54 = tpu.matmul %53, %38, %cst_15 {dimension_numbers = #tpu.dot_dimension_numbers<[2], [1], [1], [2], [0, 0, 0, 1, 1, 2], [0], [0]>} : vector<2x8x8xf32>, vector<2x8x8xf32>, vector<2x8x8xf32> -> vector<2x8x8xf32>
    "tpu.trace_stop"() : () -> ()
    %55 = vector.extract_strided_slice %6 {offsets = [0, 16], sizes = [16, 8], strides = [1, 1]} : vector<16x96xf32> to vector<16x8xf32>
    %56 = vector.shape_cast %55 : vector<16x8xf32> to vector<2x8x8xf32>
    %57 = vector.extract_strided_slice %6 {offsets = [0, 48], sizes = [16, 8], strides = [1, 1]} : vector<16x96xf32> to vector<16x8xf32>
    %58 = vector.shape_cast %57 : vector<16x8xf32> to vector<2x8x8xf32>
    %59 = vector.extract_strided_slice %6 {offsets = [0, 80], sizes = [16, 8], strides = [1, 1]} : vector<16x96xf32> to vector<16x8xf32>
    %60 = vector.shape_cast %59 : vector<16x8xf32> to vector<2x8x8xf32>
    "tpu.trace_start"() <{level = 10 : i32, message = "bqd,bkd->bqk"}> : () -> ()
    %cst_16 = arith.constant dense<0.000000e+00> : vector<2x8x8xf32>
    %61 = tpu.matmul %56, %58, %cst_16 {dimension_numbers = #tpu.dot_dimension_numbers<[2], [2], [1], [1], [0, 0, 0, 1, 1, 1], [0], [0]>} : vector<2x8x8xf32>, vector<2x8x8xf32>, vector<2x8x8xf32> -> vector<2x8x8xf32>
    %cst_17 = arith.constant -1.000000e+09 : f32
    "tpu.trace_stop"() : () -> ()
    %62 = vector.shape_cast %10 : vector<1x8x8xi1> to vector<1x8x8xi1>
    %63 = vector.broadcast %62 : vector<1x8x8xi1> to vector<2x8x8xi1>
    %64 = vector.broadcast %cst_17 : f32 to vector<2x8x8xf32>
    %65 = arith.select %63, %64, %61 : vector<2x8x8xi1>, vector<2x8x8xf32>
    %cst_18 = arith.constant dense<0xFF800000> : vector<2x8xf32>
    %66 = vector.multi_reduction <maximumf>, %65, %cst_18 [2] : vector<2x8x8xf32> to vector<2x8xf32>
    %67 = vector.shape_cast %66 : vector<2x8xf32> to vector<2x8x1xf32>
    %68 = vector.broadcast %67 : vector<2x8x1xf32> to vector<2x8x8xf32>
    %69 = arith.subf %65, %68 : vector<2x8x8xf32>
    %70 = math.exp %69 : vector<2x8x8xf32>
    %cst_19 = arith.constant dense<0.000000e+00> : vector<2x8xf32>
    %71 = vector.multi_reduction <add>, %70, %cst_19 [2] : vector<2x8x8xf32> to vector<2x8xf32>
    %72 = vector.shape_cast %71 : vector<2x8xf32> to vector<2x8x1xf32>
    %73 = tpu.reciprocal %72 : vector<2x8x1xf32> -> vector<2x8x1xf32>
    %74 = vector.broadcast %73 : vector<2x8x1xf32> to vector<2x8x8xf32>
    %75 = arith.mulf %70, %74 : vector<2x8x8xf32>
    "tpu.trace_start"() <{level = 10 : i32, message = "bqk,bkd->bqd"}> : () -> ()
    %cst_20 = arith.constant dense<0.000000e+00> : vector<2x8x8xf32>
    %76 = tpu.matmul %75, %60, %cst_20 {dimension_numbers = #tpu.dot_dimension_numbers<[2], [1], [1], [2], [0, 0, 0, 1, 1, 2], [0], [0]>} : vector<2x8x8xf32>, vector<2x8x8xf32>, vector<2x8x8xf32> -> vector<2x8x8xf32>
    "tpu.trace_stop"() : () -> ()
    %77 = vector.extract_strided_slice %6 {offsets = [0, 24], sizes = [16, 8], strides = [1, 1]} : vector<16x96xf32> to vector<16x8xf32>
    %78 = vector.shape_cast %77 : vector<16x8xf32> to vector<2x8x8xf32>
    %79 = vector.extract_strided_slice %6 {offsets = [0, 56], sizes = [16, 8], strides = [1, 1]} : vector<16x96xf32> to vector<16x8xf32>
    %80 = vector.shape_cast %79 : vector<16x8xf32> to vector<2x8x8xf32>
    %81 = vector.extract_strided_slice %6 {offsets = [0, 88], sizes = [16, 8], strides = [1, 1]} : vector<16x96xf32> to vector<16x8xf32>
    %82 = vector.shape_cast %81 : vector<16x8xf32> to vector<2x8x8xf32>
    "tpu.trace_start"() <{level = 10 : i32, message = "bqd,bkd->bqk"}> : () -> ()
    %cst_21 = arith.constant dense<0.000000e+00> : vector<2x8x8xf32>
    %83 = tpu.matmul %78, %80, %cst_21 {dimension_numbers = #tpu.dot_dimension_numbers<[2], [2], [1], [1], [0, 0, 0, 1, 1, 1], [0], [0]>} : vector<2x8x8xf32>, vector<2x8x8xf32>, vector<2x8x8xf32> -> vector<2x8x8xf32>
    %cst_22 = arith.constant -1.000000e+09 : f32
    "tpu.trace_stop"() : () -> ()
    %84 = vector.shape_cast %10 : vector<1x8x8xi1> to vector<1x8x8xi1>
    %85 = vector.broadcast %84 : vector<1x8x8xi1> to vector<2x8x8xi1>
    %86 = vector.broadcast %cst_22 : f32 to vector<2x8x8xf32>
    %87 = arith.select %85, %86, %83 : vector<2x8x8xi1>, vector<2x8x8xf32>
    %cst_23 = arith.constant dense<0xFF800000> : vector<2x8xf32>
    %88 = vector.multi_reduction <maximumf>, %87, %cst_23 [2] : vector<2x8x8xf32> to vector<2x8xf32>
    %89 = vector.shape_cast %88 : vector<2x8xf32> to vector<2x8x1xf32>
    %90 = vector.broadcast %89 : vector<2x8x1xf32> to vector<2x8x8xf32>
    %91 = arith.subf %87, %90 : vector<2x8x8xf32>
    %92 = math.exp %91 : vector<2x8x8xf32>
    %cst_24 = arith.constant dense<0.000000e+00> : vector<2x8xf32>
    %93 = vector.multi_reduction <add>, %92, %cst_24 [2] : vector<2x8x8xf32> to vector<2x8xf32>
    %94 = vector.shape_cast %93 : vector<2x8xf32> to vector<2x8x1xf32>
    %95 = tpu.reciprocal %94 : vector<2x8x1xf32> -> vector<2x8x1xf32>
    %96 = vector.broadcast %95 : vector<2x8x1xf32> to vector<2x8x8xf32>
    %97 = arith.mulf %92, %96 : vector<2x8x8xf32>
    "tpu.trace_start"() <{level = 10 : i32, message = "bqk,bkd->bqd"}> : () -> ()
    %cst_25 = arith.constant dense<0.000000e+00> : vector<2x8x8xf32>
    %98 = tpu.matmul %97, %82, %cst_25 {dimension_numbers = #tpu.dot_dimension_numbers<[2], [1], [1], [2], [0, 0, 0, 1, 1, 2], [0], [0]>} : vector<2x8x8xf32>, vector<2x8x8xf32>, vector<2x8x8xf32> -> vector<2x8x8xf32>
    "tpu.trace_stop"() : () -> ()
    %99 = tpu.concatenate %32, %54, %76, %98 in 2 : vector<2x8x8xf32>, vector<2x8x8xf32>, vector<2x8x8xf32>, vector<2x8x8xf32> -> vector<2x8x32xf32>
    %100 = vector.shape_cast %99 : vector<2x8x32xf32> to vector<16x32xf32>
    %c0_26 = arith.constant 0 : index
    %c0_27 = arith.constant 0 : index
    %101 = vector.load %arg4[%c0_26, %c0_27] : memref<32x32xf32, #tpu.memory_space<vmem>>, vector<32x32xf32>
    %cst_28 = arith.constant dense<0.000000e+00> : vector<16x32xf32>
    %102 = tpu.matmul %100, %101, %cst_28 {dimension_numbers = #tpu.dot_dimension_numbers<[1], [0], [0], [1], [0, 0, 1, 1], [], []>} : vector<16x32xf32>, vector<32x32xf32>, vector<16x32xf32> -> vector<16x32xf32>
    %c0_29 = arith.constant 0 : index
    %c0_30 = arith.constant 0 : index
    %103 = vector.load %arg5[%c0_29, %c0_30] : memref<3x32xf32, #tpu.memory_space<vmem>>, vector<3x32xf32>
    %104 = vector.extract_strided_slice %103 {offsets = [0, 0], sizes = [1, 32], strides = [1, 1]} : vector<3x32xf32> to vector<1x32xf32>
    %105 = vector.broadcast %104 : vector<1x32xf32> to vector<16x32xf32>
    %106 = arith.addf %102, %105 : vector<16x32xf32>
    %cst_31 = arith.constant dense<0.000000e+00> : vector<16xf32>
    %107 = vector.multi_reduction <add>, %106, %cst_31 [1] : vector<16x32xf32> to vector<16xf32>
    %108 = vector.shape_cast %107 : vector<16xf32> to vector<16x1xf32>
    %cst_32 = arith.constant 3.200000e+01 : f32
    %109 = vector.broadcast %cst_32 : f32 to vector<16x1xf32>
    %110 = arith.divf %108, %109 : vector<16x1xf32>
    %111 = vector.broadcast %110 : vector<16x1xf32> to vector<16x32xf32>
    %112 = arith.subf %106, %111 : vector<16x32xf32>
    %113 = arith.mulf %112, %112 : vector<16x32xf32>
    %cst_33 = arith.constant dense<0.000000e+00> : vector<16xf32>
    %114 = vector.multi_reduction <add>, %113, %cst_33 [1] : vector<16x32xf32> to vector<16xf32>
    %115 = vector.shape_cast %114 : vector<16xf32> to vector<16x1xf32>
    %cst_34 = arith.constant 3.200000e+01 : f32
    %116 = vector.broadcast %cst_34 : f32 to vector<16x1xf32>
    %117 = arith.divf %115, %116 : vector<16x1xf32>
    %118 = vector.broadcast %110 : vector<16x1xf32> to vector<16x32xf32>
    %119 = arith.subf %106, %118 : vector<16x32xf32>
    %cst_35 = arith.constant 9.99999974E-6 : f32
    %120 = vector.broadcast %cst_35 : f32 to vector<16x1xf32>
    %121 = arith.addf %117, %120 : vector<16x1xf32>
    %122 = math.rsqrt %121 : vector<16x1xf32>
    %123 = vector.broadcast %122 : vector<16x1xf32> to vector<16x32xf32>
    %124 = arith.mulf %119, %123 : vector<16x32xf32>
    %125 = vector.extract_strided_slice %103 {offsets = [1, 0], sizes = [1, 32], strides = [1, 1]} : vector<3x32xf32> to vector<1x32xf32>
    %126 = vector.broadcast %125 : vector<1x32xf32> to vector<16x32xf32>
    %127 = arith.mulf %124, %126 : vector<16x32xf32>
    %128 = vector.extract_strided_slice %103 {offsets = [2, 0], sizes = [1, 32], strides = [1, 1]} : vector<3x32xf32> to vector<1x32xf32>
    %129 = vector.broadcast %128 : vector<1x32xf32> to vector<16x32xf32>
    %130 = arith.addf %127, %129 : vector<16x32xf32>
    %131 = vector.shape_cast %130 : vector<16x32xf32> to vector<2x8x32xf32>
    %c0_36 = arith.constant 0 : index
    %c0_37 = arith.constant 0 : index
    %c0_38 = arith.constant 0 : index
    %132 = vector.load %arg6[%c0_36, %c0_37, %c0_38] : memref<2x8x32xf32, #tpu.memory_space<vmem>>, vector<2x8x32xf32>
    tpu.vector_store %arg6[%c0_36, %c0_37, %c0_38], %131 {strides = array<i32>} : memref<2x8x32xf32, #tpu.memory_space<vmem>>, vector<2x8x32xf32>,
    return
  }
  func.func @transform_0(%arg0: i32) -> (i32, i32, i32) {
    %c0_i32 = arith.constant 0 : i32
    %c0_i32_0 = arith.constant 0 : i32
    %c0_i32_1 = arith.constant 0 : i32
    %c0_i32_2 = arith.constant 0 : i32
    return %c0_i32, %c0_i32_0, %c0_i32_1 : i32, i32, i32
  }
  func.func @transform_1(%arg0: i32) -> (i32, i32) {
    %c0_i32 = arith.constant 0 : i32
    %c0_i32_0 = arith.constant 0 : i32
    %c0_i32_1 = arith.constant 0 : i32
    return %c0_i32, %c0_i32_0 : i32, i32
  }
  func.func @transform_2(%arg0: i32) -> (i32, i32) {
    %c0_i32 = arith.constant 0 : i32
    %c0_i32_0 = arith.constant 0 : i32
    %c0_i32_1 = arith.constant 0 : i32
    return %c0_i32, %c0_i32_0 : i32, i32
  }
  func.func @transform_3(%arg0: i32) -> (i32, i32) {
    %c0_i32 = arith.constant 0 : i32
    %c0_i32_0 = arith.constant 0 : i32
    %c0_i32_1 = arith.constant 0 : i32
    return %c0_i32, %c0_i32_0 : i32, i32
  }
  func.func @transform_4(%arg0: i32) -> (i32, i32) {
    %c0_i32 = arith.constant 0 : i32
    %c0_i32_0 = arith.constant 0 : i32
    %c0_i32_1 = arith.constant 0 : i32
    return %c0_i32, %c0_i32_0 : i32, i32
  }
  func.func @transform_5(%arg0: i32) -> (i32, i32, i32) {
    %c0_i32 = arith.constant 0 : i32
    %c0_i32_0 = arith.constant 0 : i32
    %c0_i32_1 = arith.constant 0 : i32
    %c0_i32_2 = arith.constant 0 : i32
    return %c0_i32, %c0_i32_0, %c0_i32_1 : i32, i32, i32
  }
}

</mosaic_0001>

<bundles_post_ra>
// kernel: tpu_custom_call.1
= control target key start
LH: loop header
LB: loop body
LE: loop exit
PB: predicated region body
PF: predicated region fallthrough
CT: control target
= control target key end

     0   :  { %10 = vsyncpa [#allocation3], 0  ;;  %s2306_s0 = inlined_call_operand.hbm [shape: f32[2,8,32], index: 0, kind: input, shape index: {}]   ;;  %s2307_s1 = inlined_call_operand.hbm [shape: f32[32,96], index: 1, kind: input, shape index: {}]   ;;  %s2308_s2 = inlined_call_operand.vmem [shape: f32[1,96], index: 2, kind: input, shape index: {}]   ;;  %s2309_s3 = inlined_call_operand.hbm [shape: f32[32,32], index: 3, kind: input, shape index: {}]   ;;  %s2310_s4 = inlined_call_operand.vmem [shape: f32[3,32], index: 4, kind: input, shape index: {}]   ;;  %s2311_s5 = inlined_call_operand.hbm [shape: f32[2,8,32], index: 5, kind: output, shape index: {}]  }
   0x1   :  { %11 = vsyncpa [#allocation6], 0 }
   0x2   :  { %12 = vsyncpa [#allocation4], 0  ;;  %s2014_s18 = smov [#allocation5]   ;;  %s2015_s20 = smov [#allocation2]  }
   0x3   :  { %s30_s19 = sshll.u32 %s2014_s18, 4  ;;  %s18_s21 = sshll.u32 %s2015_s20, 4  ;;  %s31_s19 = int_to_ptr.vmem [resolvable:$true] %s30_s19  ;;  %s2065_s21 = int_to_ptr.vmem [resolvable:$true] %s18_s21 }
   0x4   :  { %s1920_s24 = scalar_lea.hbm %s2307_s1, 512 }
   0x5   :  { %p1921_p0 = scmp.ne.s32.totalorder %s2307_s1, %s1920_s24  ;;  %p1924_p1 = scmp.lt.u32.totalorder %s1920_s24, %s2307_s1 }
   0x7   :  { %p1926_p2 = pnand %p1924_p1, %p1921_p0 }
   0x9   :  { %1929 = shalt.err (!%p1926_p2)
}
   0xa   :  { %s1930_s29 = scalar_lea.vmem %s31_s19, 512  ;;  %p1935_p4 = scmp.lt.s32.totalorder %s31_s19, %s31_s19 }
   0xb   :  { %p1931_p3 = scmp.ne.s32.totalorder %s31_s19, %s1930_s29  ;;  %p1936_p5 = scmp.lt.s32.totalorder %s1930_s29, %s1930_s29 }
   0xd   :  { %p1937_p6 = por %p1936_p5, %p1935_p4 }
   0xf   :  { %p1938_p7 = pnand %p1937_p6, %p1931_p3 }
  0x11   :  { %1941 = shalt.err (!%p1938_p7)
}
  0x12   :  { %s2016_s30 = smov 128   ;;  %s2017_s6 = smov 8  }
  0x13   :  { %36 = dma.hbm_to_vmem [thread:$0]  %s2307_s1, 512, %s31_s19, [#allocation6], %s2016_s30, %s2016_s30, %s2017_s6  }
  0x14   :  { %s1942_s11 = scalar_lea.hbm %s2306_s0, 256 }
  0x15   :  { %p1943_p8 = scmp.ne.s32.totalorder %s2306_s0, %s1942_s11  ;;  %p1946_p9 = scmp.lt.u32.totalorder %s1942_s11, %s2306_s0 }
  0x17   :  { %p1948_p10 = pnand %p1946_p9, %p1943_p8 }
  0x19   :  { %1951 = shalt.err (!%p1948_p10)
}
  0x1a   :  { %s1952_s16 = scalar_lea.vmem %s2065_s21, 256  ;;  %p1957_p12 = scmp.lt.s32.totalorder %s2065_s21, %s2065_s21 }
  0x1b   :  { %p1953_p11 = scmp.ne.s32.totalorder %s2065_s21, %s1952_s16  ;;  %p1958_p13 = scmp.lt.s32.totalorder %s1952_s16, %s1952_s16 }
  0x1d   :  { %p1959_p0 = por %p1958_p13, %p1957_p12 }
  0x1f   :  { %p1960_p1 = pnand %p1959_p0, %p1953_p11 }
  0x21   :  { %1963 = shalt.err (!%p1960_p1)
}
  0x22   :  { %24 = dma.hbm_to_vmem [thread:$0]  %s2306_s0, 256, %s2065_s21, [#allocation3], %s2016_s30, %s2016_s30, %s2017_s6  }
  0x23   :  { %s2018_s18 = smov [#allocation7]   ;;  %s1964_s23 = scalar_lea.hbm %s2309_s3, 512 }
  0x24   :  { %s44_s19 = sshll.u32 %s2018_s18, 4  ;;  %p1965_p2 = scmp.ne.s32.totalorder %s2309_s3, %s1964_s23  ;;  %s45_s19 = int_to_ptr.vmem [resolvable:$true] %s44_s19 }
  0x25   :  { %p1968_p3 = scmp.lt.u32.totalorder %s1964_s23, %s2309_s3 }
  0x27   :  { %p1970_p4 = pnand %p1968_p3, %p1965_p2 }
  0x29   :  { %1973 = shalt.err (!%p1970_p4)
}
  0x2a   :  { %s1974_s28 = scalar_lea.vmem %s45_s19, 512  ;;  %p1979_p6 = scmp.lt.s32.totalorder %s45_s19, %s45_s19 }
  0x2b   :  { %p1975_p5 = scmp.ne.s32.totalorder %s45_s19, %s1974_s28  ;;  %p1980_p7 = scmp.lt.s32.totalorder %s1974_s28, %s1974_s28 }
  0x2d   :  { %p1981_p8 = por %p1980_p7, %p1979_p6 }
  0x2f   :  { %p1982_p9 = pnand %p1981_p8, %p1975_p5 }
  0x31   :  { %1985 = shalt.err (!%p1982_p9)
}
  0x32   :  { %50 = dma.hbm_to_vmem [thread:$0]  %s2309_s3, 512, %s45_s19, [#allocation6], %s2016_s30, %s2016_s30, %s2017_s6  }
  0x33   :  { %2008 = dma.done.wait [#allocation3], 256  }
  0x34   :  { %2009 = vsyncadd [#allocation3], 4294967040 }
  0x35   :  { %2010 = dma.done.wait [#allocation6], 1024  }
  0x36   :  { %2011 = vsyncadd [#allocation6], 4294966272  ;;  %vm75_vm0 = vcmask 261120   ;;  %v64_v0 = vld [vmem:[#allocation5] sm:$0xff]  ;;  %v65_v1 = vld [vmem:[#allocation5 + $0x8] sm:$0xff]  ;;  %v2019_v8 = vmov 0.0   ;;  %v157_v16 = vlaneseq }
  0x37   :  { %v66_v2 = vld [vmem:[#allocation5 + $0x10] sm:$0xff]  ;;  %v1847_v3 = vpack.c.bf16 %v65_v1, %v64_v0  ;;  %v67_v4 = vld [vmem:[#allocation5 + $0x18] sm:$0xff]  ;;  %1756 = vmatprep.subr.mxu1 %v2019_v8  ;;  %vm2020_vm1 = vmmov 0   ;;  %s2021_s7 = smov 96   ;;  %vm165_vm2 = vcmask 64512   ;;  %s2023_s8 = smov 88  }
  0x38   :  { %v62_v5 = vld [vmem:[#allocation2] sm:$0xff]  ;;  %v1851_v6 = vpack.c.bf16 %v67_v4, %v66_v2  ;;  %v63_v7 = vld [vmem:[#allocation2 + $0x8] sm:$0xff]  ;;  %1758 = vmatprep.mubr.msk.f32.mxu1 %vm2020_vm1, %v2019_v8  ;;  %v2146_v17 = vshrl.u32 %v157_v16, 7  ;;  %v160_v18 = vand.u32 127, %v157_v16  ;;  %s2024_s9 = smov 120   ;;  %s2025_s10 = smov 56  }
  0x39   :  { %1753 = vmatprep.mubr.msk.f32.mxu0 %vm75_vm0, %v62_v5  ;;  %1848 = vmatprep.subr.bf16.mxu0 %v1847_v3  ;;  %v1672_v9 = vld [vmem:[%s2308_s2] ss:$0 sm:$0xff]  ;;  %s2022_s2 = smov 64   ;;  %s2026_s11 = smov 112   ;;  %vm1520_vm4 = vcmask 195584   ;;  %vm1517_vm5 = vcmask 130048  }
  0x3a   :  { %1850 = vmatpush3.bf16.msra.mxu0 %v1847_v3  ;;  %vm2149_vm3 = vcmp.gt.s32.totalorder %v160_v18, %v2146_v17  ;;  %s2027_s12 = smov 80   ;;  %s2028_s13 = smov 48  }
  0x3b   :  { %1852 = vmatprep.subr.bf16.mxu0 %v1851_v6  ;;  %s2029_s14 = smov 72   ;;  %s2030_s15 = smov 104  }
  0x3c   :  { %s2031_s16 = smov 40   ;;  %s2032_s1 = smov 16  }
  0x3d   :  { %s2033_s17 = smov 24  }
  0x3e   :  { %1854 = vmatpush3.bf16.msra.mxu0 %v1851_v6 }
  0x3f   :  { %1776 = vmatprep.subr.mxu0 %v2019_v8 }
  0x41   :  { %1754 = vmatmul.mubr.msk.f32.vlgmr.msra.gmra.mrb[0].mxu0 %vm75_vm0, %v63_v7 }
  0x42   :  { %1778 = vmatprep.mubr.msk.f32.mxu0 %vm2020_vm1, %v2019_v8 }
 0x114   :  { %v1755_v10 = vpop.f32.mrb[0].mxu0 }
 0x115   :  { %v148_v11 = vpop.f32.mrb[1].mxu0  ;;  %v2131_v13 = vadd.f32 %v1755_v10, %v1672_v9 }
 0x116   :  { %v2128_v12 = vadd.f32 %v1672_v9, %v148_v11 }
 0x118   :  { %163 = vrot.lane.b32.xlu0 %v2128_v12, %s2021_s7 }
 0x11c   :  { %241 = vrot.lane.b32.xlu0 %v2131_v13, %s2021_s7 }
 0x18a   :  { %v164_v14 = vpop.permute.xlu0 %163 }
 0x18b   :  { %1757 = vmatpush3.xpose.msk.msra.mxu1 %vm165_vm2, %v164_v14 }
 0x18c   :  { %1761 = vmatprep.subr.mxu1 %v2019_v8 }
 0x18e   :  { %1759 = vmatmul.mubr.msk.f32.vlgmr.msra.gmra.mrb[0].mxu1 %vm165_vm2, %v2128_v12  ;;  %v242_v15 = vpop.permute.xlu0 %241 }
 0x18f   :  { %1762 = vmatpush3.xpose.msk.msra.mxu1 %vm165_vm2, %v242_v15  ;;  %1763 = vmatprep.mubr.msk.f32.mxu1 %vm2020_vm1, %v2019_v8 }
 0x190   :  { %1766 = vmatprep.subr.mxu1 %v2019_v8 }
 0x192   :  { %1764 = vmatmul.mubr.msk.f32.vlgmr.msra.gmra.mrb[2].mxu1 %vm165_vm2, %v2131_v13 }
 0x193   :  { %1768 = vmatprep.mubr.msk.f32.mxu1 %vm2020_vm1, %v2019_v8 }
 0x261   :  { %v236_v20 = vpop.f32.mrb[0].mxu1 }
 0x262   :  { %v319_v21 = vsel %vm2149_vm3, -1e+09, %v236_v20  ;;  %v1760_v22 = vpop.f32.mrb[1].mxu1 }
 0x263   :  { %v321_v23 = vsel %vm165_vm2, %v319_v21, -inf }
 0x264   :  { %322 = vmax.xlane.f32.xlu1 %v321_v23 }
 0x265   :  { %v313_v24 = vpop.f32.mrb[2].mxu1 }
 0x266   :  { %v320_v25 = vsel %vm2149_vm3, -1e+09, %v313_v24  ;;  %v1765_v26 = vpop.f32.mrb[3].mxu1 }
 0x267   :  { %v324_v27 = vsel %vm165_vm2, %v320_v25, -inf }
 0x268   :  { %325 = vmax.xlane.f32.xlu1 %v324_v27 }
 0x279   :  { %343 = vrot.lane.b32.xlu1 %v2128_v12, %s2022_s2 }
 0x27d   :  { %419 = vrot.lane.b32.xlu1 %v2131_v13, %s2022_s2 }
 0x281   :  { %497 = vrot.lane.b32.xlu1 %v2128_v12, %s2023_s8 }
 0x285   :  { %575 = vrot.lane.b32.xlu1 %v2131_v13, %s2023_s8 }
 0x2f1   :  { %v323_v28 = vpop.xlane.xlu1 %322 }
 0x2f2   :  { %v327_v29 = vsub.f32 %v319_v21, %v323_v28 }
 0x2f4   :  { %v329_v30 = vmul.f32 1.442695, %v327_v29 }
 0x2f5   :  { %v326_v31 = vpop.xlane.xlu1 %325 }
 0x2f6   :  { %1884 = vpow2.f32 %v329_v30  ;;  %v328_v32 = vsub.f32 %v320_v25, %v326_v31 }
 0x2f8   :  { %v331_v33 = vmul.f32 1.442695, %v328_v32 }
 0x2f9   :  { %v344_v34 = vpop.permute.xlu1 %343 }
 0x2fa   :  { %1886 = vpow2.f32 %v331_v33  ;;  %1767 = vmatpush3.msra.mxu1 %v344_v34 }
 0x2fb   :  { %1771 = vmatprep.subr.mxu1 %v2019_v8 }
 0x2fd   :  { %v420_v35 = vpop.permute.xlu1 %419 }
 0x300   :  { %v1885_v36 = vpop.eup %1884 }
 0x301   :  { %v498_v37 = vpop.permute.xlu1 %497  ;;  %v333_v38 = vsel %vm165_vm2, %v1885_v36, 0.0 }
 0x302   :  { %334 = vadd.xlane.f32.xlu0 %v333_v38  ;;  %1777 = vmatpush3.xpose.msk.msra.mxu0 %vm165_vm2, %v498_v37 }
 0x303   :  { %1786 = vmatprep.subr.mxu0 %v2019_v8 }
 0x304   :  { %v1887_v39 = vpop.eup %1886 }
 0x305   :  { %v336_v40 = vsel %vm165_vm2, %v1887_v39, 0.0  ;;  %v576_v41 = vpop.permute.xlu1 %575 }
 0x306   :  { %337 = vadd.xlane.f32.xlu1 %v336_v40 }
 0x317   :  { %573 = vrot.lane.b32.xlu1 %v2131_v13, %s2024_s9 }
 0x318   :  { %495 = vrot.lane.b32.xlu0 %v2128_v12, %s2024_s9 }
 0x38f   :  { %v335_v42 = vpop.xlane.xlu0 %334 }
 0x390   :  { %1888 = vrcp.f32 %v335_v42 }
 0x393   :  { %v338_v43 = vpop.xlane.xlu1 %337  ;;  %v496_v44 = vpop.permute.xlu0 %495 }
 0x394   :  { %1890 = vrcp.f32 %v338_v43  ;;  %1779 = vmatmul.mubr.msk.f32.vlgmr.msra.gmra.mrb[2].mxu0 %vm165_vm2, %v496_v44 }
 0x395   :  { %1788 = vmatprep.mubr.msk.f32.mxu0 %vm2020_vm1, %v2019_v8 }
 0x397   :  { %v574_v49 = vpop.permute.xlu1 %573 }
 0x39a   :  { %v1889_v45 = vpop.eup %1888 }
 0x39b   :  { %v341_v46 = vmul.f32 %v1889_v45, %v1885_v36 }
 0x39d   :  { %1769 = vmatmul.mubr.msk.f32.vlgmr.msra.gmra.mrb[4].mxu1 %vm165_vm2, %v341_v46 }
 0x39e   :  { %v1891_v47 = vpop.eup %1890  ;;  %1772 = vmatpush3.msra.mxu1 %v420_v35  ;;  %1773 = vmatprep.mubr.msk.f32.mxu1 %vm2020_vm1, %v2019_v8 }
 0x39f   :  { %v342_v48 = vmul.f32 %v1891_v47, %v1887_v39  ;;  %1781 = vmatprep.subr.mxu1 %v2019_v8 }
 0x3a1   :  { %1774 = vmatmul.mubr.msk.f32.vlgmr.msra.gmra.mrb[6].mxu1 %vm165_vm2, %v342_v48 }
 0x3a2   :  { %1783 = vmatprep.mubr.msk.f32.mxu1 %vm2020_vm1, %v2019_v8 }
 0x3a5   :  { %1782 = vmatpush3.xpose.msk.msra.mxu1 %vm165_vm2, %v576_v41 }
 0x3a6   :  { %1791 = vmatprep.subr.mxu1 %v2019_v8 }
 0x3a8   :  { %1784 = vmatmul.mubr.msk.f32.vlgmr.msra.gmra.mrb[8].mxu1 %vm165_vm2, %v574_v49 }
 0x3a9   :  { %1793 = vmatprep.mubr.msk.f32.mxu1 %vm2020_vm1, %v2019_v8 }
 0x467   :  { %v569_v50 = vpop.f32.mrb[2].mxu0 }
 0x468   :  { %v651_v51 = vsel %vm2149_vm3, -1e+09, %v569_v50  ;;  %v1780_v52 = vpop.f32.mrb[3].mxu0 }
 0x469   :  { %v653_v53 = vsel %vm165_vm2, %v651_v51, -inf }
 0x46a   :  { %654 = vmax.xlane.f32.xlu1 %v653_v53 }
 0x470   :  { %v2188_v54 = vpop.f32.mrb[4].mxu1 }
 0x471   :  { %v1770_v55 = vpop.f32.mrb[5].mxu1 }
 0x474   :  { %v2190_v56 = vpop.f32.mrb[6].mxu1 }
 0x475   :  { %v1775_v57 = vpop.f32.mrb[7].mxu1 }
 0x47b   :  { %v647_v58 = vpop.f32.mrb[8].mxu1 }
 0x47c   :  { %v652_v59 = vsel %vm2149_vm3, -1e+09, %v647_v58  ;;  %v1785_v60 = vpop.f32.mrb[9].mxu1 }
 0x47d   :  { %v656_v61 = vsel %vm165_vm2, %v652_v59, -inf }
 0x47e   :  { %657 = vmax.xlane.f32.xlu0 %v656_v61 }
 0x494   :  { %751 = vrot.lane.b32.xlu0 %v2131_v13, %s2025_s10 }
 0x498   :  { %827 = vrot.lane.b32.xlu0 %v2128_v12, %s2026_s11 }
 0x4f7   :  { %v655_v62 = vpop.xlane.xlu1 %654 }
 0x4f8   :  { %v659_v63 = vsub.f32 %v651_v51, %v655_v62 }
 0x4fa   :  { %v661_v0 = vmul.f32 1.442695, %v659_v63 }
 0x4fc   :  { %1892 = vpow2.f32 %v661_v0 }
 0x506   :  { %v1893_v1 = vpop.eup %1892 }
 0x507   :  { %v665_v2 = vsel %vm165_vm2, %v1893_v1, 0.0 }
 0x508   :  { %666 = vadd.xlane.f32.xlu1 %v665_v2 }
 0x50b   :  { %v658_v3 = vpop.xlane.xlu0 %657 }
 0x50c   :  { %v660_v5 = vsub.f32 %v652_v59, %v658_v3 }
 0x50e   :  { %v663_v6 = vmul.f32 1.442695, %v660_v5 }
 0x50f   :  { %v752_v4 = vpop.permute.xlu0 %751 }
 0x510   :  { %1792 = vmatpush3.msra.mxu1 %v752_v4  ;;  %1894 = vpow2.f32 %v663_v6 }
 0x511   :  { %1801 = vmatprep.subr.mxu1 %v2019_v8 }
 0x513   :  { %v828_v18 = vpop.permute.xlu0 %827 }
 0x519   :  { %675 = vrot.lane.b32.xlu1 %v2128_v12, %s2025_s10 }
 0x51a   :  { %v1895_v7 = vpop.eup %1894 }
 0x51b   :  { %v668_v9 = vsel %vm165_vm2, %v1895_v7, 0.0 }
 0x51d   :  { %829 = vrot.lane.b32.xlu1 %v2128_v12, %s2027_s12 }
 0x521   :  { %907 = vrot.lane.b32.xlu1 %v2131_v13, %s2027_s12 }
 0x545   :  { %669 = vadd.xlane.f32.xlu1 %v668_v9 }
 0x556   :  { %905 = vrot.lane.b32.xlu1 %v2131_v13, %s2026_s11 }
 0x595   :  { %v667_v10 = vpop.xlane.xlu1 %666 }
 0x596   :  { %1896 = vrcp.f32 %v667_v10 }
 0x599   :  { %v676_v11 = vpop.permute.xlu1 %675 }
 0x59a   :  { %1787 = vmatpush3.msra.mxu0 %v676_v11 }
 0x59b   :  { %1796 = vmatprep.subr.mxu0 %v2019_v8 }
 0x59d   :  { %v830_v16 = vpop.permute.xlu1 %829 }
 0x5a0   :  { %v1897_v14 = vpop.eup %1896 }
 0x5a1   :  { %v673_v15 = vmul.f32 %v1897_v14, %v1893_v1  ;;  %v908_v20 = vpop.permute.xlu1 %907 }
 0x5a3   :  { %1789 = vmatmul.mubr.msk.f32.vlgmr.msra.gmra.mrb[4].mxu0 %vm165_vm2, %v673_v15 }
 0x5a4   :  { %1797 = vmatpush3.xpose.msk.msra.mxu0 %vm165_vm2, %v830_v16  ;;  %1798 = vmatprep.mubr.msk.f32.mxu0 %vm2020_vm1, %v2019_v8 }
 0x5a5   :  { %1806 = vmatprep.subr.mxu0 %v2019_v8 }
 0x5a7   :  { %1799 = vmatmul.mubr.msk.f32.vlgmr.msra.gmra.mrb[6].mxu0 %vm165_vm2, %v828_v18 }
 0x5a8   :  { %1808 = vmatprep.mubr.msk.f32.mxu0 %vm2020_vm1, %v2019_v8 }
 0x5d2   :  { %v670_v21 = vpop.xlane.xlu1 %669 }
 0x5d3   :  { %1898 = vrcp.f32 %v670_v21 }
 0x5d6   :  { %v906_v24 = vpop.permute.xlu1 %905 }
 0x5dd   :  { %v1899_v22 = vpop.eup %1898 }
 0x5de   :  { %v674_v23 = vmul.f32 %v1899_v22, %v1895_v7 }
 0x5e0   :  { %1794 = vmatmul.mubr.msk.f32.vlgmr.msra.gmra.mrb[10].mxu1 %vm165_vm2, %v674_v23 }
 0x5e1   :  { %1802 = vmatpush3.xpose.msk.msra.mxu1 %vm165_vm2, %v908_v20  ;;  %1803 = vmatprep.mubr.msk.f32.mxu1 %vm2020_vm1, %v2019_v8 }
 0x5e2   :  { %1811 = vmatprep.subr.mxu1 %v2019_v8 }
 0x5e4   :  { %1804 = vmatmul.mubr.msk.f32.vlgmr.msra.gmra.mrb[12].mxu1 %vm165_vm2, %v906_v24 }
 0x5e5   :  { %1813 = vmatprep.mubr.msk.f32.mxu1 %vm2020_vm1, %v2019_v8 }
 0x676   :  { %v2221_v25 = vpop.f32.mrb[4].mxu0 }
 0x677   :  { %v1790_v26 = vpop.f32.mrb[5].mxu0 }
 0x67a   :  { %v901_v27 = vpop.f32.mrb[6].mxu0 }
 0x67b   :  { %v983_v28 = vsel %vm2149_vm3, -1e+09, %v901_v27  ;;  %v1800_v29 = vpop.f32.mrb[7].mxu0 }
 0x67c   :  { %v985_v30 = vsel %vm165_vm2, %v983_v28, -inf  ;;  %v1523_v29 = vld [vmem:[#allocation7] sm:$0xff] }
 0x67d   :  { %986 = vmax.xlane.f32.xlu0 %v985_v30  ;;  %v1524_v30 = vld [vmem:[#allocation7 + $0x8] sm:$0xff] }
 0x6b3   :  { %v2226_v31 = vpop.f32.mrb[10].mxu1 }
 0x6b4   :  { %v1795_v32 = vpop.f32.mrb[11].mxu1 }
 0x6b5   :  { %v1855_v32 = vpack.c.bf16 %v1524_v30, %v1523_v29 }
 0x6b7   :  { %v979_v33 = vpop.f32.mrb[12].mxu1 }
 0x6b8   :  { %v984_v34 = vsel %vm2149_vm3, -1e+09, %v979_v33  ;;  %v1805_v35 = vpop.f32.mrb[13].mxu1 }
 0x6b9   :  { %v988_v36 = vsel %vm165_vm2, %v984_v34, -inf }
 0x6ba   :  { %989 = vmax.xlane.f32.xlu1 %v988_v36 }
 0x6cb   :  { %1007 = vrot.lane.b32.xlu1 %v2128_v12, %s2028_s13 }
 0x6cf   :  { %1161 = vrot.lane.b32.xlu1 %v2128_v12, %s2029_s14 }
 0x6d3   :  { %1239 = vrot.lane.b32.xlu1 %v2131_v13, %s2029_s14 }
 0x6d7   :  { %1237 = vrot.lane.b32.xlu1 %v2131_v13, %s2030_s15 }
 0x70a   :  { %v987_v37 = vpop.xlane.xlu0 %986 }
 0x70b   :  { %v991_v38 = vsub.f32 %v983_v28, %v987_v37 }
 0x70d   :  { %v993_v39 = vmul.f32 1.442695, %v991_v38 }
 0x70f   :  { %1900 = vpow2.f32 %v993_v39 }
 0x719   :  { %v1901_v40 = vpop.eup %1900 }
 0x71a   :  { %v997_v41 = vsel %vm165_vm2, %v1901_v40, 0.0 }
 0x71b   :  { %998 = vadd.xlane.f32.xlu0 %v997_v41 }
 0x731   :  { %1083 = vrot.lane.b32.xlu0 %v2131_v13, %s2028_s13 }
 0x747   :  { %v990_v42 = vpop.xlane.xlu1 %989 }
 0x748   :  { %v992_v43 = vsub.f32 %v984_v34, %v990_v42 }
 0x74a   :  { %v995_v44 = vmul.f32 1.442695, %v992_v43 }
 0x74b   :  { %v1008_v45 = vpop.permute.xlu1 %1007 }
 0x74c   :  { %1902 = vpow2.f32 %v995_v44  ;;  %1807 = vmatpush3.msra.mxu0 %v1008_v45 }
 0x74d   :  { %1816 = vmatprep.subr.mxu0 %v2019_v8 }
 0x74f   :  { %v1162_v52 = vpop.permute.xlu1 %1161 }
 0x753   :  { %v1240_v58 = vpop.permute.xlu1 %1239 }
 0x756   :  { %v1903_v46 = vpop.eup %1902 }
 0x757   :  { %v1000_v47 = vsel %vm165_vm2, %v1903_v46, 0.0  ;;  %v1238_v60 = vpop.permute.xlu1 %1237 }
 0x758   :  { %1001 = vadd.xlane.f32.xlu0 %v1000_v47 }
 0x76e   :  { %1159 = vrot.lane.b32.xlu0 %v2128_v12, %s2030_s15 }
 0x7a8   :  { %v999_v48 = vpop.xlane.xlu0 %998 }
 0x7a9   :  { %1904 = vrcp.f32 %v999_v48 }
 0x7ac   :  { %v1084_v49 = vpop.permute.xlu0 %1083 }
 0x7ad   :  { %1812 = vmatpush3.msra.mxu1 %v1084_v49 }
 0x7ae   :  { %1821 = vmatprep.subr.mxu1 %v2019_v8 }
 0x7b3   :  { %v1905_v50 = vpop.eup %1904 }
 0x7b4   :  { %v1005_v51 = vmul.f32 %v1905_v50, %v1901_v40  ;;  %v1530_v50 = vsub.s32 0, %v2146_v17 }
 0x7b6   :  { %1809 = vmatmul.mubr.msk.f32.vlgmr.msra.gmra.mrb[8].mxu0 %vm165_vm2, %v1005_v51 }
 0x7b7   :  { %1817 = vmatpush3.xpose.msk.msra.mxu0 %vm165_vm2, %v1162_v52  ;;  %1818 = vmatprep.mubr.msk.f32.mxu0 %vm2020_vm1, %v2019_v8 }
 0x7b8   :  { %1826 = vmatprep.subr.mxu0 %v2019_v8 }
 0x7e5   :  { %v1002_v53 = vpop.xlane.xlu0 %1001 }
 0x7e6   :  { %1906 = vrcp.f32 %v1002_v53 }
 0x7e9   :  { %v1160_v55 = vpop.permute.xlu0 %1159 }
 0x7ea   :  { %1819 = vmatmul.mubr.msk.f32.vlgmr.msra.gmra.mrb[10].mxu0 %vm165_vm2, %v1160_v55 }
 0x7eb   :  { %1828 = vmatprep.mubr.msk.f32.mxu0 %vm2020_vm1, %v2019_v8 }
 0x7f0   :  { %v1907_v57 = vpop.eup %1906 }
 0x7f1   :  { %v1006_v59 = vmul.f32 %v1907_v57, %v1903_v46 }
 0x7f3   :  { %1814 = vmatmul.mubr.msk.f32.vlgmr.msra.gmra.mrb[14].mxu1 %vm165_vm2, %v1006_v59 }
 0x7f4   :  { %1822 = vmatpush3.xpose.msk.msra.mxu1 %vm165_vm2, %v1240_v58  ;;  %1823 = vmatprep.mubr.msk.f32.mxu1 %vm2020_vm1, %v2019_v8 }
 0x7f5   :  { %1831 = vmatprep.subr.mxu1 %v2019_v8 }
 0x7f7   :  { %1824 = vmatmul.mubr.msk.f32.vlgmr.msra.gmra.mrb[16].mxu1 %vm165_vm2, %v1238_v60 }
 0x7f8   :  { %1833 = vmatprep.mubr.msk.f32.mxu1 %vm2020_vm1, %v2019_v8 }
 0x889   :  { %v1079_v61 = vpop.f32.mrb[8].mxu0 }
 0x88a   :  { %v1810_v62 = vpop.f32.mrb[9].mxu0 }
 0x8bd   :  { %v1233_v63 = vpop.f32.mrb[10].mxu0 }
 0x8be   :  { %v1315_v0 = vsel %vm2149_vm3, -1e+09, %v1233_v63  ;;  %v1820_v1 = vpop.f32.mrb[11].mxu0 }
 0x8bf   :  { %v1317_v2 = vsel %vm165_vm2, %v1315_v0, -inf }
 0x8c0   :  { %1318 = vmax.xlane.f32.xlu0 %v1317_v2 }
 0x8c6   :  { %v1155_v3 = vpop.f32.mrb[14].mxu1 }
 0x8c7   :  { %v1815_v4 = vpop.f32.mrb[15].mxu1 }
 0x8ca   :  { %v1311_v5 = vpop.f32.mrb[16].mxu1 }
 0x8cb   :  { %v1316_v6 = vsel %vm2149_vm3, -1e+09, %v1311_v5  ;;  %v1825_v7 = vpop.f32.mrb[17].mxu1 }
 0x8cc   :  { %v1320_v9 = vsel %vm165_vm2, %v1316_v6, -inf }
 0x8cd   :  { %1321 = vmax.xlane.f32.xlu1 %v1320_v9 }
 0x8de   :  { %1339 = vrot.lane.b32.xlu1 %v2128_v12, %s2031_s16 }
 0x8e2   :  { %1493 = vrot.lane.b32.xlu1 %v2221_v25, %s2017_s6 }
 0x8e6   :  { %1495 = vrot.lane.b32.xlu1 %v2226_v31, %s2017_s6  ;;  %v1525_v31 = vld [vmem:[#allocation7 + $0x10] sm:$0xff] }
 0x8ea   :  { %1503 = vrot.lane.b32.xlu1 %v1155_v3, %s2032_s1 }
 0x94d   :  { %v1319_v8 = vpop.xlane.xlu0 %1318 }
 0x94e   :  { %v1323_v10 = vsub.f32 %v1315_v0, %v1319_v8 }
 0x950   :  { %v1325_v11 = vmul.f32 1.442695, %v1323_v10 }
 0x952   :  { %1908 = vpow2.f32 %v1325_v11  ;;  %v1642_v11 = vsub.s32 1, %v2146_v17 }
 0x95a   :  { %v1322_v19 = vpop.xlane.xlu1 %1321 }
 0x95b   :  { %v1324_v14 = vsub.f32 %v1316_v6, %v1322_v19  ;;  %v1648_v19 = vsub.s32 2, %v2146_v17 }
 0x95c   :  { %v1909_v15 = vpop.eup %1908 }
 0x95d   :  { %v1327_v16 = vmul.f32 1.442695, %v1324_v14  ;;  %v1329_v18 = vsel %vm165_vm2, %v1909_v15, 0.0 }
 0x95e   :  { %v1340_v20 = vpop.permute.xlu1 %1339  ;;  %1330 = vadd.xlane.f32.xlu0 %v1329_v18 }
 0x95f   :  { %1910 = vpow2.f32 %v1327_v16  ;;  %1827 = vmatpush3.msra.mxu0 %v1340_v20 }
 0x960   :  { %1856 = vmatprep.subr.bf16.mxu0 %v1855_v32 }
 0x962   :  { %v1494_v38 = vpop.permute.xlu1 %1493 }
 0x963   :  { %v1515_v40 = vsel %vm165_vm2, %v2188_v54, %v1494_v38  ;;  %v1527_v54 = vld [vmem:[%s2310_s4] sm:$0x7]  ;;  %s2034_s4 = smov [#allocation8]  }
 0x964   :  { %v1531_v51 = vrot.slane %v1527_v54, %v1530_v50  ;;  %v1643_v14 = vrot.slane %v1527_v54, %v1642_v11  ;;  %v1649_v16 = vrot.slane %v1527_v54, %v1648_v19  ;;  %s1659_s20 = sshll.u32 %s2034_s4, 4  ;;  %s1660_s20 = int_to_ptr.vmem [resolvable:$true] %s1659_s20 }
 0x965   :  { %s1986_s22 = scalar_lea.vmem %s1660_s20, 256  ;;  %p1991_p11 = scmp.lt.s32.totalorder %s1660_s20, %s1660_s20 }
 0x966   :  { %v1496_v44 = vpop.permute.xlu1 %1495  ;;  %p1987_p10 = scmp.ne.s32.totalorder %s1660_s20, %s1986_s22  ;;  %p1992_p12 = scmp.lt.s32.totalorder %s1986_s22, %s1986_s22 }
 0x967   :  { %v1516_v46 = vsel %vm165_vm2, %v2190_v56, %v1496_v44 }
 0x968   :  { %p1993_p13 = por %p1992_p12, %p1991_p11 }
 0x969   :  { %v1911_v12 = vpop.eup %1910 }
 0x96a   :  { %v1332_v21 = vsel %vm165_vm2, %v1911_v12, 0.0  ;;  %v1504_v45 = vpop.permute.xlu1 %1503  ;;  %p1994_p0 = pnand %p1993_p13, %p1987_p10 }
 0x96b   :  { %1333 = vadd.xlane.f32.xlu0 %v1332_v21  ;;  %v1519_v47 = vsel %vm1517_vm5, %v1516_v46, %v1504_v45 }
 0x981   :  { %1415 = vrot.lane.b32.xlu0 %v2131_v13, %s2031_s16  ;;  %v1526_v13 = vld [vmem:[#allocation7 + $0x18] sm:$0xff] }
 0x982   :  { %v1859_v33 = vpack.c.bf16 %v1526_v13, %v1525_v31 }
 0x985   :  { %1501 = vrot.lane.b32.xlu0 %v1079_v61, %s2032_s1 }
 0x9eb   :  { %v1331_v22 = vpop.xlane.xlu0 %1330 }
 0x9ec   :  { %1912 = vrcp.f32 %v1331_v22 }
 0x9f6   :  { %v1913_v23 = vpop.eup %1912 }
 0x9f7   :  { %v1337_v24 = vmul.f32 %v1913_v23, %v1909_v15 }
 0x9f8   :  { %v1334_v25 = vpop.xlane.xlu0 %1333 }
 0x9f9   :  { %1914 = vrcp.f32 %v1334_v25  ;;  %1829 = vmatmul.mubr.msk.f32.vlgmr.msra.gmra.mrb[12].mxu0 %vm165_vm2, %v1337_v24 }
 0x9fa   :  { %1858 = vmatpush3.bf16.msra.mxu0 %v1855_v32 }
 0x9fb   :  { %1860 = vmatprep.subr.bf16.mxu0 %v1859_v33 }
 0x9fc   :  { %v1416_v26 = vpop.permute.xlu0 %1415 }
 0x9fd   :  { %1832 = vmatpush3.msra.mxu1 %v1416_v26 }
 0x9fe   :  { %1862 = vmatpush3.bf16.msra.mxu0 %v1859_v33 }
 0xa00   :  { %v1502_v39 = vpop.permute.xlu0 %1501 }
 0xa01   :  { %v1518_v41 = vsel %vm1517_vm5, %v1515_v40, %v1502_v39 }
 0xa03   :  { %v1915_v27 = vpop.eup %1914 }
 0xa04   :  { %v1338_v28 = vmul.f32 %v1915_v27, %v1911_v12 }
 0xa06   :  { %1834 = vmatmul.mubr.msk.f32.vlgmr.msra.gmra.mrb[18].mxu1 %vm165_vm2, %v1338_v28 }
 0xacc   :  { %v1411_v34 = vpop.f32.mrb[12].mxu0 }
 0xacd   :  { %1509 = vrot.lane.b32.xlu0 %v1411_v34, %s2033_s17  ;;  %v1830_v35 = vpop.f32.mrb[13].mxu0 }
 0xad9   :  { %v1487_v36 = vpop.f32.mrb[18].mxu1 }
 0xada   :  { %1511 = vrot.lane.b32.xlu1 %v1487_v36, %s2033_s17  ;;  %v1835_v37 = vpop.f32.mrb[19].mxu1 }
 0xb3f   :  { %v1510_v42 = vpop.permute.xlu0 %1509 }
 0xb40   :  { %v1521_v43 = vsel %vm1520_vm4, %v1518_v41, %v1510_v42 }
 0xb41   :  { %1844 = vmatprep.mubr.msk.f32.mxu0 %vm75_vm0, %v1521_v43 }
 0xb4c   :  { %v1512_v48 = vpop.permute.xlu1 %1511 }
 0xb4d   :  { %v1522_v49 = vsel %vm1520_vm4, %v1519_v47, %v1512_v48 }
 0xb4e   :  { %1845 = vmatmul.mubr.msk.f32.vlgmr.msra.gmra.mrb[14].mxu0 %vm75_vm0, %v1522_v49 }
 0xc21   :  { %v1846_v52 = vpop.f32.mrb[14].mxu0 }
 0xc22   :  { %v1610_v53 = vadd.f32 %v1846_v52, %v1531_v51  ;;  %v1604_v55 = vpop.f32.mrb[15].mxu0 }
 0xc23   :  { %v1605_v57 = vadd.f32 %v1604_v55, %v1531_v51 }
 0xc24   :  { %v1616_v58 = vsel %vm75_vm0, %v1610_v53, 0.0 }
 0xc25   :  { %1617 = vadd.xlane.f32.xlu1 %v1616_v58  ;;  %v1613_v56 = vsel %vm75_vm0, %v1605_v57, 0.0 }
 0xc26   :  { %1614 = vadd.xlane.f32.xlu0 %v1613_v56 }
 0xcb2   :  { %v1618_v59 = vpop.xlane.xlu1 %1617 }
 0xcb3   :  { %v1621_v60 = vmul.f32 0.03125, %v1618_v59  ;;  %v1615_v61 = vpop.xlane.xlu0 %1614 }
 0xcb4   :  { %v1620_v62 = vmul.f32 0.03125, %v1615_v61 }
 0xcb5   :  { %v1623_v63 = vsub.f32 %v1610_v53, %v1621_v60 }
 0xcb6   :  { %v1622_v0 = vsub.f32 %v1605_v57, %v1620_v62 }
 0xcb7   :  { %v1625_v3 = vmul.f32 %v1623_v63, %v1623_v63 }
 0xcb8   :  { %v1624_v1 = vmul.f32 %v1622_v0, %v1622_v0 }
 0xcb9   :  { %v1629_v4 = vsel %vm75_vm0, %v1625_v3, 0.0 }
 0xcba   :  { %v1626_v2 = vsel %vm75_vm0, %v1624_v1, 0.0 }
 0xcbb   :  { %1627 = vadd.xlane.f32.xlu0 %v1626_v2 }
 0xcbf   :  { %1630 = vadd.xlane.f32.xlu0 %v1629_v4 }
 0xd48   :  { %v1628_v5 = vpop.xlane.xlu0 %1627 }
 0xd49   :  { %v1632_v6 = vmul.f32 0.03125, %v1628_v5 }
 0xd4b   :  { %v1634_v7 = vadd.f32 1e-05, %v1632_v6 }
 0xd4c   :  { %v1631_v9 = vpop.xlane.xlu0 %1630 }
 0xd4d   :  { %1916 = vrsqrt.f32 %v1634_v7  ;;  %v1633_v8 = vmul.f32 0.03125, %v1631_v9 }
 0xd4f   :  { %v1635_v10 = vadd.f32 1e-05, %v1633_v8 }
 0xd51   :  { %1918 = vrsqrt.f32 %v1635_v10 }
 0xd57   :  { %v1917_v15 = vpop.eup %1916 }
 0xd58   :  { %v1638_v18 = vmul.f32 %v1917_v15, %v1622_v0 }
 0xd5a   :  { %v1644_v20 = vmul.f32 %v1643_v14, %v1638_v18 }
 0xd5b   :  { %v1919_v12 = vpop.eup %1918 }
 0xd5c   :  { %v1639_v21 = vmul.f32 %v1919_v12, %v1623_v63  ;;  %v1650_v22 = vadd.f32 %v1649_v16, %v1644_v20 }
 0xd5e   :  { %v1645_v23 = vmul.f32 %v1643_v14, %v1639_v21  ;;  %1652 = vst.msk [vmem:[#allocation8] sm:$0xff] %vm75_vm0, %v1650_v22 }
 0xd60   :  { %v1651_v24 = vadd.f32 %v1649_v16, %v1645_v23 }
 0xd62   :  { %1653 = vst.msk [vmem:[#allocation8 + $0x8] sm:$0xff] %vm75_vm0, %v1651_v24 }
 0xd63   :  { %1997 = shalt.err (!%p1994_p0)
}
 0xd64   :  { %s1998_s25 = scalar_lea.hbm %s2311_s5, 256 }
 0xd65   :  { %p1999_p1 = scmp.ne.s32.totalorder %s2311_s5, %s1998_s25  ;;  %p2002_p2 = scmp.lt.u32.totalorder %s1998_s25, %s2311_s5 }
 0xd67   :  { %p2004_p3 = pnand %p2002_p2, %p1999_p1 }
 0xd69   :  { %2007 = shalt.err (!%p2004_p3)
}
 0xd6a   :  { %1665 = dma.vmem_to_hbm [thread:$0]  %s1660_s20, 256, %s2311_s5, [#allocation4], %s2016_s30, %s2016_s30, %s2017_s6  }
 0xd6b   :  { %2012 = dma.done.wait [#allocation4], 256  }
 0xd6c   :  { %2013 = vsyncadd [#allocation4], 4294967040 }
 0xd6d   :  { %1669 = vsyncpa [#allocation3], 1 }
 0xd6e   :  { %1670 = vsyncpa [#allocation6], 1 }
 0xd6f   :  { %1671 = vsyncpa [#allocation4], 1 }

</bundles_post_ra>
